<compile_context>
chip_gen: v6e
topology: v6e:2x2x1
jax: 0.10.0
libtpu: 0.0.40
codegen_flags: <defaults>
</compile_context>

<pallas_src>
import functools

import jax
import jax.numpy as jnp
from jax.experimental import pallas as pl
from jax.experimental.pallas import tpu as pltpu


def _round_up(a: int, b: int) -> int:
    return ((a + b - 1) // b) * b


def notears_mlp_kernel(x_ref, w1_ref, b1_ref, w2_ref, b2_ref, o_ref, *, m1, d):
    """One batch tile of the NotearsMLP forward.

    x_ref:  [TILE_N, d]     input tile (bf16 or f32)
    w1_ref: [d, m1*d]       fused (W1_pos - W1_neg).T, group-major columns (col = m*d + j)
    b1_ref: [1, m1*d]       fused bias (b1_pos - b1_neg), same column order (f32)
    w2_ref: [1, m1*d]       locally-connected weight w2[j, m, 0] at column m*d + j (f32)
    b2_ref: [1, d]          locally-connected bias (f32)
    o_ref:  [TILE_N, d]     output tile
    """
    x = x_ref[...]

    # fc1_pos(x) - fc1_neg(x) == x @ (W1p - W1n).T + (b1p - b1n): one MXU dot at the
    # natural size, f32 accumulation regardless of input dtype.
    h = jnp.dot(x, w1_ref[...], preferred_element_type=jnp.float32) + b1_ref[...]

    # sigmoid via one EUP transcendental: sigmoid(h) = 0.5 * tanh(0.5 * h) + 0.5
    s = 0.5 * jnp.tanh(0.5 * h) + 0.5

    # LocallyConnected(d, m1, 1): out[n, j] = sum_m s[n, j, m] * w2[j, m] + b2[j]
    # Group-major columns -> VPU multiply then a pairwise tree-sum (depth log2(m1)) of
    # m1 contiguous d-wide lane slices.  No dense block-diagonal matmul, no padding.
    t = s * w2_ref[...]
    parts = [t[:, m * d:(m + 1) * d] for m in range(m1)]
    while len(parts) > 1:
        nxt = [parts[i] + parts[i + 1] for i in range(0, len(parts) - 1, 2)]
        if len(parts) % 2:
            nxt.append(parts[-1])
        parts = nxt

    o_ref[...] = (parts[0] + b2_ref[...]).astype(o_ref.dtype)


def notears_mlp_forward(x, w1_pos, b1_pos, w1_neg, b1_neg, w2, b2,
                        *, tile_n_max=512, use_bf16=True):
    """NotearsMLP.forward for dims = [d, m1, 1].

    x: [n, d]; w1_*: [d*m1, d]; b1_*: [d*m1]; w2: [d, m1, 1]; b2: [d, 1].
    """
    # TODO(synk): only a single fc2 LocallyConnected layer (dims == [d, m1, 1]) is
    # implemented; a deeper fc2 stack would need per-layer weights chained in-kernel.
    n, d = x.shape
    dm1 = w1_pos.shape[0]
    assert dm1 % d == 0, "fc1 weight rows must be d * m1"
    m1 = dm1 // d
    C = m1 * d

    f32 = jnp.float32
    in_dtype = jnp.bfloat16 if use_bf16 else f32
    in_isz = jnp.dtype(in_dtype).itemsize
    out_isz = jnp.dtype(x.dtype).itemsize

    # ---- parameter plumbing (plain JAX, once per call) -----------------------------
    # Fuse pos/neg Linear into one weight/bias in f32 BEFORE any narrowing cast.
    w1 = (w1_pos - w1_neg).astype(f32)                        # [d*m1, d], row = j*m1 + m
    b1 = (b1_pos - b1_neg).astype(f32)                        # [d*m1]

    # Re-order columns to group-major (col = m*d + j); NO padding.
    w1_arr = jnp.transpose(w1.reshape(d, m1, d), (2, 1, 0)).reshape(d, C).astype(in_dtype)
    b1_arr = b1.reshape(d, m1).T.reshape(1, C)                # [1, m1*d] f32
    w2_arr = w2[:, :, 0].astype(f32).T.reshape(1, C)          # [1, m1*d] f32
    b2_arr = b2[:, 0].astype(f32).reshape(1, d)               # [1, d]    f32
    x_in = x.astype(in_dtype)                                 # no zero-padded copy

    # ---- generation-aware tile size & VMEM budget -----------------------------------
    try:
        vmem_cap = int(pltpu.get_tpu_info().vmem_capacity_bytes)
    except Exception:
        vmem_cap = 64 << 20                     # conservative fallback (v7x per-TC VMEM)

    fixed = d * C * in_isz + (2 * C + d) * 4    # single-buffered w1 + b1/w2/b2
    per_row = (2 * d * in_isz                   # x tile (double-buffered)
               + 2 * d * out_isz                # out tile (double-buffered)
               + 6 * C * 4 + d * 4)             # live f32 intermediates (h/s/t + slices)
    budget = int(vmem_cap * 0.6)
    tile_cap = max(16, ((budget - fixed) // max(per_row, 1)) // 16 * 16)
    tile_n = min(tile_n_max, tile_cap, _round_up(n, 16))
    tile_n = max(16, (tile_n // 16) * 16)       # bf16 needs 16-row sublane packing
    grid = (pl.cdiv(n, tile_n),)

    vmem_est = fixed + tile_n * per_row
    vmem_limit = int(min(max(int(vmem_est * 1.5), 32 << 20), int(vmem_cap * 0.85)))

    # TODO(synk): w1 is kept fully resident in VMEM (fine up to d in the high hundreds);
    # for very large d, add a second "arbitrary" grid axis over m1-groups with an
    # accumulator so w1 streams in column blocks instead.
    kernel = functools.partial(notears_mlp_kernel, m1=m1, d=d)

    out = pl.pallas_call(
        kernel,
        out_shape=jax.ShapeDtypeStruct((n, d), x.dtype),
        grid_spec=pltpu.PrefetchScalarGridSpec(
            num_scalar_prefetch=0,
            grid=grid,
            in_specs=[
                pl.BlockSpec((tile_n, d), lambda i: (i, 0)),          # x: batch-tiled
                pl.BlockSpec((d, C), lambda i: (0, 0),
                             pipeline_mode=pl.Buffered(1)),           # w1: resident, 1-buf
                pl.BlockSpec((1, C), lambda i: (0, 0),
                             pipeline_mode=pl.Buffered(1)),           # b1
                pl.BlockSpec((1, C), lambda i: (0, 0),
                             pipeline_mode=pl.Buffered(1)),           # w2
                pl.BlockSpec((1, d), lambda i: (0, 0),
                             pipeline_mode=pl.Buffered(1)),           # b2
            ],
            out_specs=pl.BlockSpec((tile_n, d), lambda i: (i, 0)),
        ),
        compiler_params=pltpu.CompilerParams(
            dimension_semantics=("parallel",),   # shard batch tiles across v7x's 2 TCs
            vmem_limit_bytes=vmem_limit,
        ),
    )(x_in, w1_arr, b1_arr, w2_arr, b2_arr)

    return out


def reference_forward(x, w1_pos, b1_pos, w1_neg, b1_neg, w2, b2):
    """Pure-JAX reference mirroring the PyTorch forward."""
    n, d = x.shape
    m1 = w1_pos.shape[0] // d
    h = x @ (w1_pos - w1_neg).T + (b1_pos - b1_neg)      # [n, d*m1]
    h = h.reshape(n, d, m1)
    s = jax.nn.sigmoid(h)                                # [n, d, m1]
    out = jnp.einsum('ndm,dmo->ndo', s, w2) + b2[None]   # [n, d, 1]
    return out[..., 0]                                   # [n, d]


if __name__ == "__main__":
    # dims = [d, m1, 1]
    d, m1, n = 8, 16, 100
    key = jax.random.PRNGKey(0)
    ks = jax.random.split(key, 7)

    x = jax.random.normal(ks[0], (n, d), dtype=jnp.float32)
    w1_pos = jax.random.normal(ks[1], (d * m1, d), dtype=jnp.float32) * 0.1
    b1_pos = jax.random.normal(ks[2], (d * m1,), dtype=jnp.float32) * 0.1
    w1_neg = jax.random.normal(ks[3], (d * m1, d), dtype=jnp.float32) * 0.1
    b1_neg = jax.random.normal(ks[4], (d * m1,), dtype=jnp.float32) * 0.1
    w2 = jax.random.normal(ks[5], (d, m1, 1), dtype=jnp.float32) * 0.1
    b2 = jax.random.normal(ks[6], (d, 1), dtype=jnp.float32) * 0.1

    ref = reference_forward(x, w1_pos, b1_pos, w1_neg, b1_neg, w2, b2)

    # Exact f32 path (tight tolerance).
    out_f32 = jax.block_until_ready(
        notears_mlp_forward(x, w1_pos, b1_pos, w1_neg, b1_neg, w2, b2, use_bf16=False))
    assert out_f32.shape == (n, d)
    assert jnp.allclose(out_f32, ref, atol=1e-5, rtol=1e-5)

    # Default path: bf16 matmul inputs, f32 accumulation (looser tolerance).
    out_def = jax.block_until_ready(
        notears_mlp_forward(x, w1_pos, b1_pos, w1_neg, b1_neg, w2, b2))
    assert out_def.shape == (n, d)
    assert jnp.allclose(out_def, ref, atol=5e-3, rtol=5e-3)

    print("KERNEL_OK")
</pallas_src>

<mosaic_0001>
module attributes {stable_mosaic.version = 11 : i64} {
  func.func @notears_mlp_kernel(%arg0: i32, %arg1: memref<112x8xf32, #tpu.memory_space<vmem>>, %arg2: memref<8x128xf32, #tpu.memory_space<vmem>>, %arg3: memref<1x128xf32, #tpu.memory_space<vmem>>, %arg4: memref<1x128xf32, #tpu.memory_space<vmem>>, %arg5: memref<1x8xf32, #tpu.memory_space<vmem>>, %arg6: memref<112x8xf32, #tpu.memory_space<vmem>>) attributes {dimension_semantics = [#tpu.dimension_semantics<parallel>], iteration_bounds = array<i64: 1>, scalar_prefetch = 0 : i64, scratch_operands = 0 : i64, tpu.core_type = #tpu.core_type<tc>, window_params = [{transform_indices = @transform_0, window_bounds = array<i64: 112, 8>}, {pipeline_mode = #tpu.pipeline_mode<synchronous>, transform_indices = @transform_1, window_bounds = array<i64: 8, 128>}, {pipeline_mode = #tpu.pipeline_mode<synchronous>, transform_indices = @transform_2, window_bounds = array<i64: 1, 128>}, {pipeline_mode = #tpu.pipeline_mode<synchronous>, transform_indices = @transform_3, window_bounds = array<i64: 1, 128>}, {pipeline_mode = #tpu.pipeline_mode<synchronous>, transform_indices = @transform_4, window_bounds = array<i64: 1, 8>}, {transform_indices = @transform_5, window_bounds = array<i64: 112, 8>}]} {
    %c0 = arith.constant 0 : index
    %c0_0 = arith.constant 0 : index
    %0 = vector.load %arg1[%c0, %c0_0] : memref<112x8xf32, #tpu.memory_space<vmem>>, vector<112x8xf32>
    %c0_1 = arith.constant 0 : index
    %c0_2 = arith.constant 0 : index
    %1 = vector.load %arg2[%c0_1, %c0_2] : memref<8x128xf32, #tpu.memory_space<vmem>>, vector<8x128xf32>
    %cst = arith.constant dense<0.000000e+00> : vector<112x128xf32>
    %2 = tpu.matmul %0, %1, %cst {dimension_numbers = #tpu.dot_dimension_numbers<[1], [0], [0], [1], [0, 0, 1, 1], [], []>} : vector<112x8xf32>, vector<8x128xf32>, vector<112x128xf32> -> vector<112x128xf32>
    %c0_3 = arith.constant 0 : index
    %c0_4 = arith.constant 0 : index
    %3 = vector.load %arg3[%c0_3, %c0_4] : memref<1x128xf32, #tpu.memory_space<vmem>>, vector<1x128xf32>
    %4 = vector.broadcast %3 : vector<1x128xf32> to vector<112x128xf32>
    %5 = arith.addf %2, %4 : vector<112x128xf32>
    %cst_5 = arith.constant 5.000000e-01 : f32
    %6 = vector.broadcast %cst_5 : f32 to vector<112x128xf32>
    %7 = arith.mulf %6, %5 : vector<112x128xf32>
    %8 = math.tanh %7 : vector<112x128xf32>
    %cst_6 = arith.constant 5.000000e-01 : f32
    %9 = vector.broadcast %cst_6 : f32 to vector<112x128xf32>
    %10 = arith.mulf %9, %8 : vector<112x128xf32>
    %cst_7 = arith.constant 5.000000e-01 : f32
    %11 = vector.broadcast %cst_7 : f32 to vector<112x128xf32>
    %12 = arith.addf %10, %11 : vector<112x128xf32>
    %c0_8 = arith.constant 0 : index
    %c0_9 = arith.constant 0 : index
    %13 = vector.load %arg4[%c0_8, %c0_9] : memref<1x128xf32, #tpu.memory_space<vmem>>, vector<1x128xf32>
    %14 = vector.broadcast %13 : vector<1x128xf32> to vector<112x128xf32>
    %15 = arith.mulf %12, %14 : vector<112x128xf32>
    %16 = vector.extract_strided_slice %15 {offsets = [0, 0], sizes = [112, 8], strides = [1, 1]} : vector<112x128xf32> to vector<112x8xf32>
    %17 = vector.extract_strided_slice %15 {offsets = [0, 8], sizes = [112, 8], strides = [1, 1]} : vector<112x128xf32> to vector<112x8xf32>
    %18 = vector.extract_strided_slice %15 {offsets = [0, 16], sizes = [112, 8], strides = [1, 1]} : vector<112x128xf32> to vector<112x8xf32>
    %19 = vector.extract_strided_slice %15 {offsets = [0, 24], sizes = [112, 8], strides = [1, 1]} : vector<112x128xf32> to vector<112x8xf32>
    %20 = vector.extract_strided_slice %15 {offsets = [0, 32], sizes = [112, 8], strides = [1, 1]} : vector<112x128xf32> to vector<112x8xf32>
    %21 = vector.extract_strided_slice %15 {offsets = [0, 40], sizes = [112, 8], strides = [1, 1]} : vector<112x128xf32> to vector<112x8xf32>
    %22 = vector.extract_strided_slice %15 {offsets = [0, 48], sizes = [112, 8], strides = [1, 1]} : vector<112x128xf32> to vector<112x8xf32>
    %23 = vector.extract_strided_slice %15 {offsets = [0, 56], sizes = [112, 8], strides = [1, 1]} : vector<112x128xf32> to vector<112x8xf32>
    %24 = vector.extract_strided_slice %15 {offsets = [0, 64], sizes = [112, 8], strides = [1, 1]} : vector<112x128xf32> to vector<112x8xf32>
    %25 = vector.extract_strided_slice %15 {offsets = [0, 72], sizes = [112, 8], strides = [1, 1]} : vector<112x128xf32> to vector<112x8xf32>
    %26 = vector.extract_strided_slice %15 {offsets = [0, 80], sizes = [112, 8], strides = [1, 1]} : vector<112x128xf32> to vector<112x8xf32>
    %27 = vector.extract_strided_slice %15 {offsets = [0, 88], sizes = [112, 8], strides = [1, 1]} : vector<112x128xf32> to vector<112x8xf32>
    %28 = vector.extract_strided_slice %15 {offsets = [0, 96], sizes = [112, 8], strides = [1, 1]} : vector<112x128xf32> to vector<112x8xf32>
    %29 = vector.extract_strided_slice %15 {offsets = [0, 104], sizes = [112, 8], strides = [1, 1]} : vector<112x128xf32> to vector<112x8xf32>
    %30 = vector.extract_strided_slice %15 {offsets = [0, 112], sizes = [112, 8], strides = [1, 1]} : vector<112x128xf32> to vector<112x8xf32>
    %31 = vector.extract_strided_slice %15 {offsets = [0, 120], sizes = [112, 8], strides = [1, 1]} : vector<112x128xf32> to vector<112x8xf32>
    %32 = arith.addf %16, %17 : vector<112x8xf32>
    %33 = arith.addf %18, %19 : vector<112x8xf32>
    %34 = arith.addf %20, %21 : vector<112x8xf32>
    %35 = arith.addf %22, %23 : vector<112x8xf32>
    %36 = arith.addf %24, %25 : vector<112x8xf32>
    %37 = arith.addf %26, %27 : vector<112x8xf32>
    %38 = arith.addf %28, %29 : vector<112x8xf32>
    %39 = arith.addf %30, %31 : vector<112x8xf32>
    %40 = arith.addf %32, %33 : vector<112x8xf32>
    %41 = arith.addf %34, %35 : vector<112x8xf32>
    %42 = arith.addf %36, %37 : vector<112x8xf32>
    %43 = arith.addf %38, %39 : vector<112x8xf32>
    %44 = arith.addf %40, %41 : vector<112x8xf32>
    %45 = arith.addf %42, %43 : vector<112x8xf32>
    %46 = arith.addf %44, %45 : vector<112x8xf32>
    %c0_10 = arith.constant 0 : index
    %c0_11 = arith.constant 0 : index
    %47 = vector.load %arg5[%c0_10, %c0_11] : memref<1x8xf32, #tpu.memory_space<vmem>>, vector<1x8xf32>
    %48 = vector.broadcast %47 : vector<1x8xf32> to vector<112x8xf32>
    %49 = arith.addf %46, %48 : vector<112x8xf32>
    %c0_12 = arith.constant 0 : index
    %c0_13 = arith.constant 0 : index
    %50 = vector.load %arg6[%c0_12, %c0_13] : memref<112x8xf32, #tpu.memory_space<vmem>>, vector<112x8xf32>
    tpu.vector_store %arg6[%c0_12, %c0_13], %49 {strides = array<i32>} : memref<112x8xf32, #tpu.memory_space<vmem>>, vector<112x8xf32>,
    return
  }
  func.func @transform_0(%arg0: i32) -> (i32, i32) {
    %c0_i32 = arith.constant 0 : i32
    %c0_i32_0 = arith.constant 0 : i32
    return %arg0, %c0_i32 : i32, i32
  }
  func.func @transform_1(%arg0: i32) -> (i32, i32) {
    %c0_i32 = arith.constant 0 : i32
    %c0_i32_0 = arith.constant 0 : i32
    %c0_i32_1 = arith.constant 0 : i32
    return %c0_i32, %c0_i32_0 : i32, i32
  }
  func.func @transform_2(%arg0: i32) -> (i32, i32) {
    %c0_i32 = arith.constant 0 : i32
    %c0_i32_0 = arith.constant 0 : i32
    %c0_i32_1 = arith.constant 0 : i32
    return %c0_i32, %c0_i32_0 : i32, i32
  }
  func.func @transform_3(%arg0: i32) -> (i32, i32) {
    %c0_i32 = arith.constant 0 : i32
    %c0_i32_0 = arith.constant 0 : i32
    %c0_i32_1 = arith.constant 0 : i32
    return %c0_i32, %c0_i32_0 : i32, i32
  }
  func.func @transform_4(%arg0: i32) -> (i32, i32) {
    %c0_i32 = arith.constant 0 : i32
    %c0_i32_0 = arith.constant 0 : i32
    %c0_i32_1 = arith.constant 0 : i32
    return %c0_i32, %c0_i32_0 : i32, i32
  }
  func.func @transform_5(%arg0: i32) -> (i32, i32) {
    %c0_i32 = arith.constant 0 : i32
    %c0_i32_0 = arith.constant 0 : i32
    return %arg0, %c0_i32 : i32, i32
  }
}

</mosaic_0001>

<bundles_post_ra>
// kernel: tpu_custom_call.1
= control target key start
LH: loop header
LB: loop body
LE: loop exit
PB: predicated region body
PF: predicated region fallthrough
CT: control target
= control target key end

     0   :  { %vm42_vm0 = vcmask 64512   ;;  %s791_s24 = smov 112   ;;  %s792_s25 = smov 96   ;;  %s1039_s0 = inlined_call_operand.vmem [shape: f32[100,8], index: 0, kind: input, shape index: {}]   ;;  %s1040_s1 = inlined_call_operand.vmem [shape: f32[8,128], index: 1, kind: input, shape index: {}]   ;;  %s1041_s2 = inlined_call_operand.vmem [shape: f32[1,128], index: 2, kind: input, shape index: {}]   ;;  %s1042_s3 = inlined_call_operand.vmem [shape: f32[1,128], index: 3, kind: input, shape index: {}]   ;;  %s1043_s4 = inlined_call_operand.vmem [shape: f32[1,8], index: 4, kind: input, shape index: {}]   ;;  %s1044_s5 = inlined_call_operand.vmem [shape: f32[100,8], index: 5, kind: output, shape index: {}]  }
   0x1   :  { %v34_v0 = vld [vmem:[%s1040_s1] sm:$0xff]  ;;  %v21_v3 = vld [vmem:[%s1039_s0 + $0x8] sm:$0xff]  ;;  %v22_v5 = vld [vmem:[%s1039_s0 + $0x10] sm:$0xff]  ;;  %s793_s26 = smov 64  }
   0x2   :  { %v20_v1 = vld [vmem:[%s1039_s0] sm:$0xff]  ;;  %733 = vmatprep.subr.mxu0 %v34_v0  ;;  %756 = vmatprep.subr.mxu1 %v34_v0  ;;  %v29_v4 = vld [vmem:[%s1039_s0 + $0x48] sm:$0xff]  ;;  %v30_v6 = vld [vmem:[%s1039_s0 + $0x50] sm:$0xff] }
   0x3   :  { %v28_v2 = vld [vmem:[%s1039_s0 + $0x40] sm:$0xff]  ;;  %734 = vmatpush3.msra.mxu0 %v34_v0  ;;  %757 = vmatpush3.msra.mxu1 %v34_v0  ;;  %v23_v7 = vld [vmem:[%s1039_s0 + $0x18] sm:$0xff]  ;;  %v25_v11 = vld [vmem:[%s1039_s0 + $0x28] sm:$0xff] }
   0x4   :  { %735 = vmatprep.mubr.msk.f32.mxu0 %vm42_vm0, %v20_v1  ;;  %747 = vmatprep.mubr.msk.f32.mxu1 %vm42_vm0, %v28_v2  ;;  %v31_v8 = vld [vmem:[%s1039_s0 + $0x58] sm:$0xff]  ;;  %v24_v9 = vld [vmem:[%s1039_s0 + $0x20] sm:$0xff]  ;;  %v33_v12 = vld [vmem:[%s1039_s0 + $0x68] sm:$0xff] }
   0x5   :  { %736 = vmatmul.mubr.msk.f32.vlgmr.msra.gmra.mxu0 %vm42_vm0, %v21_v3  ;;  %748 = vmatmul.mubr.msk.f32.vlgmr.msra.gmra.mxu1 %vm42_vm0, %v29_v4  ;;  %v32_v10 = vld [vmem:[%s1039_s0 + $0x60] sm:$0xff]  ;;  %v26_v13 = vld [vmem:[%s1039_s0 + $0x30] sm:$0xff]  ;;  %v27_v14 = vld [vmem:[%s1039_s0 + $0x38] sm:$0xff] }
   0x6   :  { %738 = vmatprep.mubr.msk.f32.mxu0 %vm42_vm0, %v22_v5  ;;  %750 = vmatprep.mubr.msk.f32.mxu1 %vm42_vm0, %v30_v6  ;;  %v701_v15 = vld [vmem:[%s1041_s2] ss:$0 sm:$0xff] }
   0x7   :  { %v889_v63 = vld [vmem:[%s1042_s3] ss:$0 sm:$0xff]  ;;  %s790_s3 = smov 120  }
   0x9   :  { %739 = vmatmul.mubr.msk.f32.gmra.mxu0 %vm42_vm0, %v23_v7  ;;  %751 = vmatmul.mubr.msk.f32.gmra.mxu1 %vm42_vm0, %v31_v8 }
   0xa   :  { %741 = vmatprep.mubr.msk.f32.mxu0 %vm42_vm0, %v24_v9  ;;  %753 = vmatprep.mubr.msk.f32.mxu1 %vm42_vm0, %v32_v10 }
   0xd   :  { %742 = vmatmul.mubr.msk.f32.gmra.mxu0 %vm42_vm0, %v25_v11  ;;  %754 = vmatmul.mubr.msk.f32.gmra.mxu1 %vm42_vm0, %v33_v12 }
   0xe   :  { %744 = vmatprep.mubr.msk.f32.mxu0 %vm42_vm0, %v26_v13 }
  0x11   :  { %745 = vmatmul.mubr.msk.f32.gmra.mxu0 %vm42_vm0, %v27_v14 }
  0xc5   :  { %v737_v16 = vpop.f32.mrf.mxu0  ;;  %v749_v17 = vpop.f32.mrf.mxu1 }
  0xc6   :  { %v157_v18 = vadd.f32 %v737_v16, %v701_v15  ;;  %v197_v19 = vadd.f32 %v749_v17, %v701_v15 }
  0xc7   :  { %v151_v20 = vpop.f32.mrf.mxu0  ;;  %v191_v21 = vpop.f32.mrf.mxu1 }
  0xc8   :  { %v221_v22 = vmul.f32 0.5, %v157_v18  ;;  %v229_v23 = vmul.f32 0.5, %v197_v19  ;;  %v152_v24 = vadd.f32 %v701_v15, %v151_v20  ;;  %v192_v25 = vadd.f32 %v701_v15, %v191_v21 }
  0xc9   :  { %v740_v26 = vpop.f32.mrf.mxu0  ;;  %v752_v27 = vpop.f32.mrf.mxu1 }
  0xca   :  { %762 = vtanh.f32 %v221_v22  ;;  %v220_v28 = vmul.f32 0.5, %v152_v24  ;;  %v167_v29 = vadd.f32 %v740_v26, %v701_v15  ;;  %v228_v30 = vmul.f32 0.5, %v192_v25 }
  0xcb   :  { %764 = vtanh.f32 %v229_v23  ;;  %v161_v31 = vpop.f32.mrf.mxu0  ;;  %v201_v32 = vpop.f32.mrf.mxu1  ;;  %v207_v45 = vadd.f32 %v752_v27, %v701_v15 }
  0xcc   :  { %766 = vtanh.f32 %v220_v28  ;;  %v223_v33 = vmul.f32 0.5, %v167_v29  ;;  %v162_v34 = vadd.f32 %v701_v15, %v161_v31  ;;  %v202_v35 = vadd.f32 %v701_v15, %v201_v32 }
  0xcd   :  { %768 = vtanh.f32 %v228_v30  ;;  %v743_v36 = vpop.f32.mrf.mxu0  ;;  %v755_v37 = vpop.f32.mrf.mxu1  ;;  %v231_v54 = vmul.f32 0.5, %v207_v45 }
  0xce   :  { %770 = vtanh.f32 %v223_v33  ;;  %v222_v38 = vmul.f32 0.5, %v162_v34  ;;  %v177_v39 = vadd.f32 %v743_v36, %v701_v15  ;;  %v230_v40 = vmul.f32 0.5, %v202_v35 }
  0xcf   :  { %v171_v41 = vpop.f32.mrf.mxu0  ;;  %v211_v42 = vpop.f32.mrf.mxu1  ;;  %v217_v51 = vadd.f32 %v755_v37, %v701_v15 }
  0xd0   :  { %772 = vtanh.f32 %v222_v38  ;;  %v225_v43 = vmul.f32 0.5, %v177_v39  ;;  %v172_v44 = vadd.f32 %v701_v15, %v171_v41  ;;  %v212_v49 = vadd.f32 %v701_v15, %v211_v42 }
  0xd1   :  { %774 = vtanh.f32 %v230_v40  ;;  %v746_v46 = vpop.f32.mrf.mxu0  ;;  %v233_v58 = vmul.f32 0.5, %v217_v51 }
  0xd2   :  { %776 = vtanh.f32 %v225_v43  ;;  %v224_v47 = vmul.f32 0.5, %v172_v44  ;;  %v187_v48 = vadd.f32 %v746_v46, %v701_v15  ;;  %v232_v56 = vmul.f32 0.5, %v212_v49 }
  0xd3   :  { %v181_v50 = vpop.f32.mrf.mxu0 }
  0xd4   :  { %778 = vtanh.f32 %v224_v47  ;;  %v227_v52 = vmul.f32 0.5, %v187_v48  ;;  %v182_v53 = vadd.f32 %v701_v15, %v181_v50 }
  0xd6   :  { %780 = vtanh.f32 %v227_v52  ;;  %v226_v55 = vmul.f32 0.5, %v182_v53 }
  0xd7   :  { %v763_v57 = vpop.eup %762 }
  0xd8   :  { %v765_v59 = vpop.eup %764  ;;  %782 = vtanh.f32 %v226_v55  ;;  %v249_v60 = vmul.f32 0.5, %v763_v57 }
  0xd9   :  { %v767_v61 = vpop.eup %766  ;;  %784 = vtanh.f32 %v231_v54  ;;  %v257_v62 = vmul.f32 0.5, %v765_v59 }
  0xda   :  { %v769_v0 = vpop.eup %768  ;;  %v248_v1 = vmul.f32 0.5, %v767_v61  ;;  %786 = vtanh.f32 %v232_v56  ;;  %v263_v2 = vadd.f32 0.5, %v249_v60 }
  0xdb   :  { %v771_v3 = vpop.eup %770  ;;  %v256_v4 = vmul.f32 0.5, %v769_v0  ;;  %788 = vtanh.f32 %v233_v58  ;;  %v271_v5 = vadd.f32 0.5, %v257_v62 }
  0xdc   :  { %v262_v6 = vadd.f32 0.5, %v248_v1  ;;  %v251_v7 = vmul.f32 0.5, %v771_v3  ;;  %v284_v8 = vmul.f32 %v889_v63, %v263_v2 }
  0xdd   :  { %v773_v9 = vpop.eup %772  ;;  %v292_v10 = vmul.f32 %v889_v63, %v271_v5  ;;  %v270_v15 = vadd.f32 0.5, %v256_v4 }
  0xde   :  { %v775_v11 = vpop.eup %774  ;;  %v265_v12 = vadd.f32 0.5, %v251_v7  ;;  %v250_v13 = vmul.f32 0.5, %v773_v9  ;;  %313 = vrot.lane.b32.xlu0 %v284_v8, %s790_s3  ;;  %v283_v20 = vmul.f32 %v889_v63, %v262_v6 }
  0xdf   :  { %v777_v14 = vpop.eup %776  ;;  %v258_v16 = vmul.f32 0.5, %v775_v11  ;;  %329 = vrot.lane.b32.xlu1 %v292_v10, %s790_s3  ;;  %v291_v28 = vmul.f32 %v889_v63, %v270_v15 }
  0xe0   :  { %v264_v17 = vadd.f32 0.5, %v250_v13  ;;  %v253_v18 = vmul.f32 0.5, %v777_v14  ;;  %v286_v19 = vmul.f32 %v889_v63, %v265_v12 }
  0xe1   :  { %v779_v21 = vpop.eup %778  ;;  %v272_v22 = vadd.f32 0.5, %v258_v16 }
  0xe2   :  { %v252_v23 = vmul.f32 0.5, %v779_v21  ;;  %311 = vrot.lane.b32.xlu0 %v283_v20, %s790_s3  ;;  %v267_v25 = vadd.f32 0.5, %v253_v18  ;;  %v285_v26 = vmul.f32 %v889_v63, %v264_v17 }
  0xe3   :  { %v781_v24 = vpop.eup %780  ;;  %317 = vrot.lane.b32.xlu1 %v286_v19, %s790_s3  ;;  %v293_v33 = vmul.f32 %v889_v63, %v272_v22 }
  0xe4   :  { %v255_v27 = vmul.f32 0.5, %v781_v24  ;;  %v266_v31 = vadd.f32 0.5, %v252_v23  ;;  %v288_v36 = vmul.f32 %v889_v63, %v267_v25 }
  0xe5   :  { %v783_v29 = vpop.eup %782 }
  0xe6   :  { %v785_v30 = vpop.eup %784  ;;  %v254_v32 = vmul.f32 0.5, %v783_v29  ;;  %327 = vrot.lane.b32.xlu0 %v291_v28, %s790_s3  ;;  %v269_v35 = vadd.f32 0.5, %v255_v27  ;;  %v287_v41 = vmul.f32 %v889_v63, %v266_v31 }
  0xe7   :  { %v787_v34 = vpop.eup %786  ;;  %315 = vrot.lane.b32.xlu1 %v285_v26, %s790_s3  ;;  %v259_v38 = vmul.f32 0.5, %v785_v30 }
  0xe8   :  { %v789_v37 = vpop.eup %788  ;;  %v268_v39 = vadd.f32 0.5, %v254_v32  ;;  %v260_v40 = vmul.f32 0.5, %v787_v34  ;;  %v290_v43 = vmul.f32 %v889_v63, %v269_v35 }
  0xe9   :  { %v261_v42 = vmul.f32 0.5, %v789_v37  ;;  %v273_v44 = vadd.f32 0.5, %v259_v38 }
  0xea   :  { %331 = vrot.lane.b32.xlu0 %v293_v33, %s790_s3  ;;  %v274_v45 = vadd.f32 0.5, %v260_v40  ;;  %v289_v46 = vmul.f32 %v889_v63, %v268_v39 }
  0xeb   :  { %321 = vrot.lane.b32.xlu1 %v288_v36, %s790_s3  ;;  %v275_v47 = vadd.f32 0.5, %v261_v42  ;;  %v294_v48 = vmul.f32 %v889_v63, %v273_v44 }
  0xec   :  { %v295_v49 = vmul.f32 %v889_v63, %v274_v45 }
  0xed   :  { %v296_v50 = vmul.f32 %v889_v63, %v275_v47 }
  0xee   :  { %319 = vrot.lane.b32.xlu0 %v287_v41, %s790_s3 }
  0xef   :  { %325 = vrot.lane.b32.xlu1 %v290_v43, %s790_s3 }
  0xf2   :  { %323 = vrot.lane.b32.xlu0 %v289_v46, %s790_s3 }
  0xf3   :  { %333 = vrot.lane.b32.xlu1 %v294_v48, %s790_s3 }
  0xf6   :  { %335 = vrot.lane.b32.xlu0 %v295_v49, %s790_s3 }
  0xf7   :  { %337 = vrot.lane.b32.xlu1 %v296_v50, %s790_s3 }
 0x150   :  { %v314_v51 = vpop.permute.xlu0 %313 }
 0x151   :  { %v330_v52 = vpop.permute.xlu1 %329  ;;  %v354_v53 = vadd.f32 %v314_v51, %v284_v8 }
 0x152   :  { %v362_v55 = vadd.f32 %v330_v52, %v292_v10 }
 0x153   :  { %383 = vrot.lane.b32.xlu1 %v354_v53, %s791_s24 }
 0x154   :  { %v312_v54 = vpop.permute.xlu0 %311 }
 0x155   :  { %v318_v56 = vpop.permute.xlu1 %317  ;;  %v353_v57 = vadd.f32 %v312_v54, %v283_v20 }
 0x156   :  { %v356_v59 = vadd.f32 %v318_v56, %v286_v19 }
 0x157   :  { %399 = vrot.lane.b32.xlu1 %v362_v55, %s791_s24  ;;  %381 = vrot.lane.b32.xlu0 %v353_v57, %s791_s24 }
 0x158   :  { %v328_v58 = vpop.permute.xlu0 %327 }
 0x159   :  { %v316_v60 = vpop.permute.xlu1 %315  ;;  %v361_v61 = vadd.f32 %v328_v58, %v291_v28 }
 0x15a   :  { %v355_v63 = vadd.f32 %v316_v60, %v285_v26 }
 0x15b   :  { %387 = vrot.lane.b32.xlu1 %v356_v59, %s791_s24  ;;  %397 = vrot.lane.b32.xlu0 %v361_v61, %s791_s24 }
 0x15c   :  { %v332_v62 = vpop.permute.xlu0 %331 }
 0x15d   :  { %v322_v0 = vpop.permute.xlu1 %321  ;;  %v363_v3 = vadd.f32 %v332_v62, %v293_v33 }
 0x15e   :  { %v358_v1 = vadd.f32 %v322_v0, %v288_v36 }
 0x15f   :  { %385 = vrot.lane.b32.xlu0 %v355_v63, %s791_s24 }
 0x160   :  { %391 = vrot.lane.b32.xlu1 %v358_v1, %s791_s24  ;;  %v320_v2 = vpop.permute.xlu0 %319 }
 0x161   :  { %v326_v4 = vpop.permute.xlu1 %325  ;;  %v357_v7 = vadd.f32 %v320_v2, %v287_v41 }
 0x162   :  { %v360_v5 = vadd.f32 %v326_v4, %v290_v43 }
 0x163   :  { %401 = vrot.lane.b32.xlu0 %v363_v3, %s791_s24 }
 0x164   :  { %395 = vrot.lane.b32.xlu1 %v360_v5, %s791_s24  ;;  %v324_v6 = vpop.permute.xlu0 %323 }
 0x165   :  { %v334_v8 = vpop.permute.xlu1 %333  ;;  %v359_v10 = vadd.f32 %v324_v6, %v289_v46 }
 0x166   :  { %v364_v9 = vadd.f32 %v334_v8, %v294_v48 }
 0x167   :  { %389 = vrot.lane.b32.xlu0 %v357_v7, %s791_s24 }
 0x168   :  { %403 = vrot.lane.b32.xlu1 %v364_v9, %s791_s24  ;;  %v336_v13 = vpop.permute.xlu0 %335 }
 0x169   :  { %v338_v11 = vpop.permute.xlu1 %337  ;;  %v365_v14 = vadd.f32 %v336_v13, %v295_v49 }
 0x16a   :  { %v366_v12 = vadd.f32 %v338_v11, %v296_v50 }
 0x16b   :  { %393 = vrot.lane.b32.xlu0 %v359_v10, %s791_s24 }
 0x16c   :  { %407 = vrot.lane.b32.xlu1 %v366_v12, %s791_s24 }
 0x16f   :  { %405 = vrot.lane.b32.xlu0 %v365_v14, %s791_s24 }
 0x1c5   :  { %v384_v15 = vpop.permute.xlu1 %383 }
 0x1c6   :  { %v424_v16 = vadd.f32 %v384_v15, %v354_v53 }
 0x1c8   :  { %453 = vrot.lane.b32.xlu1 %v424_v16, %s792_s25 }
 0x1c9   :  { %v400_v17 = vpop.permute.xlu1 %399  ;;  %v382_v18 = vpop.permute.xlu0 %381 }
 0x1ca   :  { %v432_v19 = vadd.f32 %v400_v17, %v362_v55  ;;  %v423_v20 = vadd.f32 %v382_v18, %v353_v57 }
 0x1cc   :  { %469 = vrot.lane.b32.xlu1 %v432_v19, %s792_s25  ;;  %451 = vrot.lane.b32.xlu0 %v423_v20, %s792_s25 }
 0x1cd   :  { %v388_v21 = vpop.permute.xlu1 %387  ;;  %v398_v22 = vpop.permute.xlu0 %397 }
 0x1ce   :  { %v426_v23 = vadd.f32 %v388_v21, %v356_v59  ;;  %v431_v24 = vadd.f32 %v398_v22, %v361_v61 }
 0x1d0   :  { %457 = vrot.lane.b32.xlu1 %v426_v23, %s792_s25  ;;  %467 = vrot.lane.b32.xlu0 %v431_v24, %s792_s25 }
 0x1d1   :  { %v386_v25 = vpop.permute.xlu0 %385 }
 0x1d2   :  { %v392_v26 = vpop.permute.xlu1 %391  ;;  %v425_v27 = vadd.f32 %v386_v25, %v355_v63 }
 0x1d3   :  { %v428_v28 = vadd.f32 %v392_v26, %v358_v1 }
 0x1d4   :  { %455 = vrot.lane.b32.xlu0 %v425_v27, %s792_s25 }
 0x1d5   :  { %461 = vrot.lane.b32.xlu1 %v428_v28, %s792_s25  ;;  %v402_v29 = vpop.permute.xlu0 %401 }
 0x1d6   :  { %v396_v30 = vpop.permute.xlu1 %395  ;;  %v433_v31 = vadd.f32 %v402_v29, %v363_v3 }
 0x1d7   :  { %v430_v32 = vadd.f32 %v396_v30, %v360_v5 }
 0x1d8   :  { %471 = vrot.lane.b32.xlu0 %v433_v31, %s792_s25 }
 0x1d9   :  { %465 = vrot.lane.b32.xlu1 %v430_v32, %s792_s25  ;;  %v390_v33 = vpop.permute.xlu0 %389 }
 0x1da   :  { %v404_v34 = vpop.permute.xlu1 %403  ;;  %v427_v35 = vadd.f32 %v390_v33, %v357_v7  ;;  %v970_v7 = vld [vmem:[%s1043_s4] ss:$0 sm:$0xff] }
 0x1db   :  { %v434_v36 = vadd.f32 %v404_v34, %v364_v9 }
 0x1dc   :  { %459 = vrot.lane.b32.xlu0 %v427_v35, %s792_s25 }
 0x1dd   :  { %473 = vrot.lane.b32.xlu1 %v434_v36, %s792_s25  ;;  %v394_v37 = vpop.permute.xlu0 %393 }
 0x1de   :  { %v408_v38 = vpop.permute.xlu1 %407  ;;  %v429_v39 = vadd.f32 %v394_v37, %v359_v10 }
 0x1df   :  { %v436_v40 = vadd.f32 %v408_v38, %v366_v12 }
 0x1e0   :  { %463 = vrot.lane.b32.xlu0 %v429_v39, %s792_s25 }
 0x1e1   :  { %477 = vrot.lane.b32.xlu1 %v436_v40, %s792_s25  ;;  %v406_v41 = vpop.permute.xlu0 %405 }
 0x1e2   :  { %v435_v42 = vadd.f32 %v406_v41, %v365_v14 }
 0x1e4   :  { %475 = vrot.lane.b32.xlu0 %v435_v42, %s792_s25 }
 0x23a   :  { %v454_v43 = vpop.permute.xlu1 %453 }
 0x23b   :  { %v494_v44 = vadd.f32 %v454_v43, %v424_v16 }
 0x23d   :  { %523 = vrot.lane.b32.xlu1 %v494_v44, %s793_s26 }
 0x23e   :  { %v470_v45 = vpop.permute.xlu1 %469  ;;  %v452_v46 = vpop.permute.xlu0 %451 }
 0x23f   :  { %v502_v47 = vadd.f32 %v470_v45, %v432_v19  ;;  %v493_v48 = vadd.f32 %v452_v46, %v423_v20 }
 0x241   :  { %539 = vrot.lane.b32.xlu1 %v502_v47, %s793_s26  ;;  %521 = vrot.lane.b32.xlu0 %v493_v48, %s793_s26 }
 0x242   :  { %v458_v49 = vpop.permute.xlu1 %457  ;;  %v468_v50 = vpop.permute.xlu0 %467 }
 0x243   :  { %v496_v51 = vadd.f32 %v458_v49, %v426_v23  ;;  %v501_v52 = vadd.f32 %v468_v50, %v431_v24 }
 0x245   :  { %527 = vrot.lane.b32.xlu1 %v496_v51, %s793_s26  ;;  %537 = vrot.lane.b32.xlu0 %v501_v52, %s793_s26 }
 0x246   :  { %v456_v53 = vpop.permute.xlu0 %455 }
 0x247   :  { %v462_v54 = vpop.permute.xlu1 %461  ;;  %v495_v55 = vadd.f32 %v456_v53, %v425_v27 }
 0x248   :  { %v498_v56 = vadd.f32 %v462_v54, %v428_v28 }
 0x249   :  { %525 = vrot.lane.b32.xlu0 %v495_v55, %s793_s26 }
 0x24a   :  { %531 = vrot.lane.b32.xlu1 %v498_v56, %s793_s26  ;;  %v472_v57 = vpop.permute.xlu0 %471 }
 0x24b   :  { %v466_v58 = vpop.permute.xlu1 %465  ;;  %v503_v59 = vadd.f32 %v472_v57, %v433_v31 }
 0x24c   :  { %v500_v60 = vadd.f32 %v466_v58, %v430_v32 }
 0x24d   :  { %541 = vrot.lane.b32.xlu0 %v503_v59, %s793_s26 }
 0x24e   :  { %535 = vrot.lane.b32.xlu1 %v500_v60, %s793_s26  ;;  %v460_v61 = vpop.permute.xlu0 %459 }
 0x24f   :  { %v474_v62 = vpop.permute.xlu1 %473  ;;  %v497_v63 = vadd.f32 %v460_v61, %v427_v35 }
 0x250   :  { %v504_v0 = vadd.f32 %v474_v62, %v434_v36 }
 0x251   :  { %529 = vrot.lane.b32.xlu0 %v497_v63, %s793_s26 }
 0x252   :  { %543 = vrot.lane.b32.xlu1 %v504_v0, %s793_s26  ;;  %v464_v1 = vpop.permute.xlu0 %463 }
 0x253   :  { %v478_v2 = vpop.permute.xlu1 %477  ;;  %v958_v3 = vadd.f32 %v464_v1, %v429_v39 }
 0x254   :  { %v506_v4 = vadd.f32 %v478_v2, %v436_v40 }
 0x255   :  { %533 = vrot.lane.b32.xlu0 %v958_v3, %s793_s26 }
 0x256   :  { %547 = vrot.lane.b32.xlu1 %v506_v4, %s793_s26  ;;  %v476_v5 = vpop.permute.xlu0 %475 }
 0x257   :  { %v963_v6 = vadd.f32 %v476_v5, %v435_v42 }
 0x259   :  { %545 = vrot.lane.b32.xlu0 %v963_v6, %s793_s26 }
 0x2af   :  { %v524_v8 = vpop.permute.xlu1 %523 }
 0x2b0   :  { %v564_v9 = vadd.f32 %v524_v8, %v494_v44 }
 0x2b2   :  { %v585_v10 = vadd.f32 %v970_v7, %v564_v9 }
 0x2b3   :  { %v540_v11 = vpop.permute.xlu1 %539  ;;  %v522_v12 = vpop.permute.xlu0 %521 }
 0x2b4   :  { %599 = vst.msk [vmem:[#allocation2 + $0x8] sm:$0xff] %vm42_vm0, %v585_v10  ;;  %v572_v13 = vadd.f32 %v540_v11, %v502_v47  ;;  %v563_v14 = vadd.f32 %v522_v12, %v493_v48 }
 0x2b6   :  { %v593_v15 = vadd.f32 %v970_v7, %v572_v13  ;;  %v584_v16 = vadd.f32 %v970_v7, %v563_v14 }
 0x2b7   :  { %v528_v17 = vpop.permute.xlu1 %527  ;;  %v538_v18 = vpop.permute.xlu0 %537 }
 0x2b8   :  { %607 = vst.msk [vmem:[#allocation2 + $0x48] sm:$0xff] %vm42_vm0, %v593_v15  ;;  %598 = vst.msk [vmem:[#allocation2] sm:$0xff] %vm42_vm0, %v584_v16  ;;  %v566_v19 = vadd.f32 %v528_v17, %v496_v51  ;;  %v571_v20 = vadd.f32 %v538_v18, %v501_v52 }
 0x2ba   :  { %v587_v21 = vadd.f32 %v970_v7, %v566_v19  ;;  %v592_v22 = vadd.f32 %v970_v7, %v571_v20 }
 0x2bb   :  { %v668_v23 = vld [vmem:[#allocation2 + $0x8] sm:$0xff]  ;;  %v526_v24 = vpop.permute.xlu0 %525 }
 0x2bc   :  { %669 = vst [vmem:[%s1044_s5 + $0x8] sm:$0xff] %v668_v23  ;;  %601 = vst.msk [vmem:[#allocation2 + $0x18] sm:$0xff] %vm42_vm0, %v587_v21  ;;  %v532_v25 = vpop.permute.xlu1 %531  ;;  %v565_v26 = vadd.f32 %v526_v24, %v495_v55 }
 0x2bd   :  { %606 = vst.msk [vmem:[#allocation2 + $0x40] sm:$0xff] %vm42_vm0, %v592_v22  ;;  %v568_v27 = vadd.f32 %v532_v25, %v498_v56 }
 0x2be   :  { %v586_v28 = vadd.f32 %v970_v7, %v565_v26 }
 0x2bf   :  { %v684_v29 = vld [vmem:[#allocation2 + $0x48] sm:$0xff]  ;;  %v666_v30 = vld [vmem:[#allocation2] sm:$0xff]  ;;  %v589_v31 = vadd.f32 %v970_v7, %v568_v27  ;;  %v542_v32 = vpop.permute.xlu0 %541 }
 0x2c0   :  { %685 = vst [vmem:[%s1044_s5 + $0x48] sm:$0xff] %v684_v29  ;;  %667 = vst [vmem:[%s1044_s5] sm:$0xff] %v666_v30  ;;  %v536_v33 = vpop.permute.xlu1 %535  ;;  %v573_v34 = vadd.f32 %v542_v32, %v503_v59 }
 0x2c1   :  { %600 = vst.msk [vmem:[#allocation2 + $0x10] sm:$0xff] %vm42_vm0, %v586_v28  ;;  %603 = vst.msk [vmem:[#allocation2 + $0x28] sm:$0xff] %vm42_vm0, %v589_v31  ;;  %v570_v35 = vadd.f32 %v536_v33, %v500_v60 }
 0x2c2   :  { %v594_v36 = vadd.f32 %v970_v7, %v573_v34 }
 0x2c3   :  { %v672_v37 = vld [vmem:[#allocation2 + $0x18] sm:$0xff]  ;;  %v591_v39 = vadd.f32 %v970_v7, %v570_v35  ;;  %v530_v40 = vpop.permute.xlu0 %529 }
 0x2c4   :  { %v682_v38 = vld [vmem:[#allocation2 + $0x40] sm:$0xff]  ;;  %673 = vst [vmem:[%s1044_s5 + $0x18] sm:$0xff] %v672_v37  ;;  %608 = vst.msk [vmem:[#allocation2 + $0x50] sm:$0xff] %vm42_vm0, %v594_v36  ;;  %v544_v41 = vpop.permute.xlu1 %543  ;;  %v567_v42 = vadd.f32 %v530_v40, %v497_v63 }
 0x2c5   :  { %683 = vst [vmem:[%s1044_s5 + $0x40] sm:$0xff] %v682_v38  ;;  %605 = vst.msk [vmem:[#allocation2 + $0x38] sm:$0xff] %vm42_vm0, %v591_v39  ;;  %v574_v43 = vadd.f32 %v544_v41, %v504_v0 }
 0x2c6   :  { %v588_v44 = vadd.f32 %v970_v7, %v567_v42 }
 0x2c7   :  { %v595_v46 = vadd.f32 %v970_v7, %v574_v43  ;;  %v534_v47 = vpop.permute.xlu0 %533 }
 0x2c8   :  { %v670_v45 = vld [vmem:[#allocation2 + $0x10] sm:$0xff]  ;;  %v676_v48 = vld [vmem:[#allocation2 + $0x28] sm:$0xff]  ;;  %602 = vst.msk [vmem:[#allocation2 + $0x20] sm:$0xff] %vm42_vm0, %v588_v44  ;;  %v548_v49 = vpop.permute.xlu1 %547  ;;  %v569_v50 = vadd.f32 %v534_v47, %v958_v3 }
 0x2c9   :  { %671 = vst [vmem:[%s1044_s5 + $0x10] sm:$0xff] %v670_v45  ;;  %677 = vst [vmem:[%s1044_s5 + $0x28] sm:$0xff] %v676_v48 }
 0x2ca   :  { %609 = vst.msk [vmem:[#allocation2 + $0x58] sm:$0xff] %vm42_vm0, %v595_v46  ;;  %v590_v51 = vadd.f32 %v970_v7, %v569_v50 }
 0x2cb   :  { %v686_v52 = vld [vmem:[#allocation2 + $0x50] sm:$0xff]  ;;  %v546_v53 = vpop.permute.xlu0 %545 }
 0x2cc   :  { %v680_v54 = vld [vmem:[#allocation2 + $0x38] sm:$0xff]  ;;  %687 = vst [vmem:[%s1044_s5 + $0x50] sm:$0xff] %v686_v52  ;;  %604 = vst.msk [vmem:[#allocation2 + $0x30] sm:$0xff] %vm42_vm0, %v590_v51  ;;  %v575_v55 = vadd.f32 %v546_v53, %v963_v6 }
 0x2cd   :  { %681 = vst [vmem:[%s1044_s5 + $0x38] sm:$0xff] %v680_v54 }
 0x2ce   :  { %v596_v56 = vadd.f32 %v970_v7, %v575_v55 }
 0x2cf   :  { %v674_v57 = vld [vmem:[#allocation2 + $0x20] sm:$0xff] }
 0x2d0   :  { %675 = vst [vmem:[%s1044_s5 + $0x20] sm:$0xff] %v674_v57  ;;  %610 = vst.msk [vmem:[#allocation2 + $0x60] sm:$0xff] %vm42_vm0, %v596_v56 }
 0x2d1   :  { %v688_v58 = vld [vmem:[#allocation2 + $0x58] sm:$0xff] }
 0x2d2   :  { %689 = vst [vmem:[%s1044_s5 + $0x58] sm:$0xff] %v688_v58 }
 0x2d3   :  { %v678_v59 = vld [vmem:[#allocation2 + $0x30] sm:$0xff] }
 0x2d4   :  { %679 = vst [vmem:[%s1044_s5 + $0x30] sm:$0xff] %v678_v59 }
 0x2d7   :  { %v690_v60 = vld [vmem:[#allocation2 + $0x60] sm:$0xff] }
 0x2d8   :  { %691 = vst [vmem:[%s1044_s5 + $0x60] sm:$0xff] %v690_v60 }

</bundles_post_ra>
